<compile_context>
chip_gen: v5e
topology: v5e:2x2
jax: 0.10.0
libtpu: 0.0.40
codegen_flags: <defaults>
</compile_context>

<pallas_src>
import math
import functools

import jax
import jax.numpy as jnp
from jax.experimental import pallas as pl
from jax.experimental.pallas import tpu as pltpu


def _loss_kernel(bs_ref, ft_ref, c1_ref, fc_ref, fm_ref, fo_ref, mnc_ref,
                 nct_ref, out_ref, *, den_target, lbda, gamma, p):
    """Fused spar_loss + balance_loss.

    bs_ref  : SMEM (1,) int32  -- batch_size (runtime scalar, no recompile)
    ft_ref  : VMEM (N, L)      -- flops_tensor   (flops_real[0])
    c1_ref  : VMEM (N, k1)     -- flops_conv1    (flops_real[1])
    fc_ref  : VMEM (N, k2)     -- flops_fc       (flops_real[2])
    fm_ref  : VMEM (N, L)      -- flops_mask
    fo_ref  : VMEM (N, L)      -- flops_ori
    mnc_ref : VMEM (N, C)      -- mask_norm_c
    nct_ref : VMEM (N, C)      -- norm_c_t
    out_ref : VMEM (1, 2)      -- [sloss, bloss]
    """
    f32 = jnp.float32
    bs = bs_ref[0]

    def batch_row_mask(n_rows):
        # Sublane iota mask replaces the sub-(8,128)-tile slice x[0:bs, :]
        # -> stays on the VPU, no VMEM relayout, batch_size stays dynamic.
        row = jax.lax.broadcasted_iota(jnp.int32, (n_rows, 1), 0)
        return row < bs

    def mean0_sum(ref):
        # x.mean(0).sum() == sum(x) / n_rows  (single full reduction)
        return jnp.sum(ref[...].astype(f32)) * (1.0 / float(ref.shape[0]))

    def full_mean(ref):
        n, w = ref.shape
        return jnp.sum(ref[...].astype(f32)) * (1.0 / float(n * w))

    # ---------------- spar_loss ----------------
    n_ft = ft_ref.shape[0]
    rows_ft = jnp.minimum(bs, n_ft).astype(f32)      # torch mean(0) divisor
    ft = ft_ref[...].astype(f32)
    flops_conv = jnp.sum(jnp.where(batch_row_mask(n_ft), ft, 0.0)) / rows_ft
    flops_mask_s = mean0_sum(fm_ref)
    conv1_mean = full_mean(c1_ref)
    fc_mean = full_mean(fc_ref)
    flops_ori_t = mean0_sum(fo_ref) + conv1_mean + fc_mean
    flops_real_t = flops_conv + flops_mask_s + conv1_mean + fc_mean
    sloss = lbda * (flops_real_t / flops_ori_t - den_target) ** 2

    # ---------------- balance_loss ----------------
    n_mn = mnc_ref.shape[0]
    rows_mn = jnp.minimum(bs, n_mn).astype(f32)
    mnc = mnc_ref[...].astype(f32)
    nct = nct_ref[...].astype(f32)
    nct_mean = jnp.sum(nct, axis=0, keepdims=True) * (1.0 / float(nct_ref.shape[0]))
    mnc_mean = (jnp.sum(jnp.where(batch_row_mask(n_mn), mnc, 0.0),
                        axis=0, keepdims=True) / rows_mn)
    den_c = mnc_mean / nct_mean                      # (1, C)
    den_tar = math.sqrt(den_target)                  # python scalar, as in torch
    bloss_l = jnp.mean(jnp.maximum(p * den_tar - den_c, 0.0) ** 2)
    bloss_u = jnp.mean(jnp.maximum(den_c - 1.0 + p - p * den_tar, 0.0) ** 2)
    bloss = gamma * (bloss_l + bloss_u)

    # One combined (1, 2) store: [sloss, bloss].
    lane = jax.lax.broadcasted_iota(jnp.int32, (1, 2), 1)
    out_ref[...] = jnp.where(lane == 0, sloss, bloss).astype(out_ref.dtype)


@functools.partial(jax.jit, static_argnames=("den_target", "lbda", "gamma", "p"))
def loss_forward(flops_real, flops_mask, flops_ori, batch_size, den_target,
                 lbda, mask_norm_c, norm_c_t, gamma, p):
    """Pallas equivalent of Loss.forward -> (sloss, bloss) scalars.

    Whole path (scalar cast, pallas_call, output unpack) is one jit, so eager
    callers pay a single dispatch.  batch_size is a dynamic argument (python
    int or device int32 array) -> no recompile per value.
    """
    flops_tensor, flops_conv1, flops_fc = flops_real
    # NOTE: batch_size == 0 yields inf/NaN (divide by zero), matching the
    # torch reference's behaviour on an empty slice.
    bs_arr = jnp.asarray(batch_size, dtype=jnp.int32).reshape((1,))

    tensor_inputs = (flops_tensor, flops_conv1, flops_fc, flops_mask,
                     flops_ori, mask_norm_c, norm_c_t)

    # Advisory cost hint: this custom call is microsecond-cheap.
    bytes_accessed = sum(int(a.size) * a.dtype.itemsize for a in tensor_inputs) + 4 + 8
    flops = 4 * sum(int(a.size) for a in tensor_inputs) + 64

    kernel = functools.partial(
        _loss_kernel,
        den_target=float(den_target),
        lbda=float(lbda),
        gamma=float(gamma),
        p=float(p),
    )

    # TODO(synk): for very large N, switch to a row-tiled grid with
    # dimension_semantics=("parallel",) per-core partial (1,2) outputs and a
    # trivial final combine (keeps VMEM O(tile) on v7x's 64 MiB and uses both
    # TensorCores); at these shapes a single gridless call is cheapest.
    out = pl.pallas_call(
        kernel,
        out_shape=jax.ShapeDtypeStruct((1, 2), jnp.float32),
        in_specs=[pl.BlockSpec(memory_space=pltpu.MemorySpace.SMEM)]
                 + [pl.BlockSpec(memory_space=pltpu.MemorySpace.VMEM)] * 7,
        out_specs=pl.BlockSpec(memory_space=pltpu.MemorySpace.VMEM),
        cost_estimate=pl.CostEstimate(flops=flops, transcendentals=0,
                                      bytes_accessed=bytes_accessed),
    )(bs_arr, *tensor_inputs)
    # Unpacked inside the jit -> no extra eager slice dispatches.
    return out[0, 0], out[0, 1]


def _reference(flops_real, flops_mask, flops_ori, batch_size, den_target,
               lbda, mask_norm_c, norm_c_t, gamma, p):
    """Pure-JAX port of the PyTorch reference, used for a correctness check."""
    flops_tensor, flops_conv1, flops_fc = flops_real
    flops_conv = flops_tensor[0:batch_size, :].mean(0).sum()
    flops_mask_s = flops_mask.mean(0).sum()
    flops_ori_t = flops_ori.mean(0).sum() + flops_conv1.mean() + flops_fc.mean()
    flops_real_t = flops_conv + flops_mask_s + flops_conv1.mean() + flops_fc.mean()
    sloss = lbda * (flops_real_t / flops_ori_t - den_target) ** 2

    norm_c_t_mean = norm_c_t.mean(0)
    den_c = mask_norm_c[0:batch_size, :].mean(0) / norm_c_t_mean
    den_tar = math.sqrt(den_target)
    bloss_l = (jnp.maximum(p * den_tar - den_c, 0.0) ** 2).mean()
    bloss_u = (jnp.maximum(den_c - 1.0 + p - p * den_tar, 0.0) ** 2).mean()
    bloss = gamma * (bloss_l + bloss_u)
    return sloss, bloss


if __name__ == "__main__":
    key = jax.random.PRNGKey(0)
    k = jax.random.split(key, 7)

    N, L, C = 4, 8, 16          # rows, #layers, #channels
    batch_size = jnp.asarray(2, dtype=jnp.int32)   # device scalar (no host xfer)
    den_target = 0.5
    lbda = 5.0
    gamma = 1.0
    p = 0.3

    flops_tensor = jax.random.uniform(k[0], (N, L), jnp.float32, 10.0, 100.0)
    flops_conv1 = jax.random.uniform(k[1], (N, 1), jnp.float32, 10.0, 100.0)
    flops_fc = jax.random.uniform(k[2], (N, 1), jnp.float32, 10.0, 100.0)
    flops_mask = jax.random.uniform(k[3], (N, L), jnp.float32, 1.0, 10.0)
    flops_ori = jax.random.uniform(k[4], (N, L), jnp.float32, 50.0, 200.0)
    mask_norm_c = jax.random.uniform(k[5], (N, C), jnp.float32, 0.1, 1.0)
    norm_c_t = jax.random.uniform(k[6], (N, C), jnp.float32, 0.5, 1.5)

    flops_real = (flops_tensor, flops_conv1, flops_fc)

    sloss, bloss = loss_forward(flops_real, flops_mask, flops_ori, batch_size,
                                den_target, lbda, mask_norm_c, norm_c_t,
                                gamma, p)
    jax.block_until_ready((sloss, bloss))

    sloss_ref, bloss_ref = _reference(flops_real, flops_mask, flops_ori,
                                      int(batch_size), den_target, lbda,
                                      mask_norm_c, norm_c_t, gamma, p)

    assert jnp.allclose(sloss, sloss_ref, rtol=1e-5, atol=1e-6), (sloss, sloss_ref)
    assert jnp.allclose(bloss, bloss_ref, rtol=1e-5, atol=1e-6), (bloss, bloss_ref)

    print("KERNEL_OK")
</pallas_src>

<mosaic_0001>
module attributes {stable_mosaic.version = 11 : i64} {
  func.func @_loss_kernel(%arg0: memref<1xi32, #tpu.memory_space<smem>>, %arg1: memref<4x8xf32, #tpu.memory_space<vmem>>, %arg2: memref<4x1xf32, #tpu.memory_space<vmem>>, %arg3: memref<4x1xf32, #tpu.memory_space<vmem>>, %arg4: memref<4x8xf32, #tpu.memory_space<vmem>>, %arg5: memref<4x8xf32, #tpu.memory_space<vmem>>, %arg6: memref<4x16xf32, #tpu.memory_space<vmem>>, %arg7: memref<4x16xf32, #tpu.memory_space<vmem>>, %arg8: memref<1x2xf32, #tpu.memory_space<vmem>>) attributes {dimension_semantics = [], scalar_prefetch = 0 : i64, scratch_operands = 0 : i64, tpu.core_type = #tpu.core_type<tc>} {
    %c0 = arith.constant 0 : index
    %0 = memref.load %arg0[%c0] : memref<1xi32, #tpu.memory_space<smem>>
    %c4_i32 = arith.constant 4 : i32
    %1 = arith.minsi %0, %c4_i32 : i32
    %2 = arith.sitofp %1 : i32 to f32
    %c0_0 = arith.constant 0 : index
    %c0_1 = arith.constant 0 : index
    %3 = vector.load %arg1[%c0_0, %c0_1] : memref<4x8xf32, #tpu.memory_space<vmem>>, vector<4x8xf32>
    %4 = tpu.iota {dimensions = array<i32: 0>} : vector<4x1xi32>
    %5 = vector.broadcast %0 : i32 to vector<4x1xi32>
    %6 = arith.cmpi slt, %4, %5 : vector<4x1xi32>
    %cst = arith.constant 0.000000e+00 : f32
    %7 = vector.shape_cast %6 : vector<4x1xi1> to vector<4x1xi1>
    %8 = vector.broadcast %7 : vector<4x1xi1> to vector<4x8xi1>
    %9 = vector.broadcast %cst : f32 to vector<4x8xf32>
    %10 = arith.select %8, %3, %9 : vector<4x8xi1>, vector<4x8xf32>
    %11 = vector.shape_cast %10 : vector<4x8xf32> to vector<1x4x8xf32>
    %cst_2 = arith.constant dense<0.000000e+00> : vector<1xf32>
    %12 = vector.multi_reduction <add>, %11, %cst_2 [1, 2] : vector<1x4x8xf32> to vector<1xf32>
    %13 = vector.shape_cast %12 : vector<1xf32> to vector<1x1x1xf32>
    %14 = vector.extract %13[0, 0, 0] : f32 from vector<1x1x1xf32>
    %15 = arith.divf %14, %2 : f32
    %c0_3 = arith.constant 0 : index
    %c0_4 = arith.constant 0 : index
    %16 = vector.load %arg4[%c0_3, %c0_4] : memref<4x8xf32, #tpu.memory_space<vmem>>, vector<4x8xf32>
    %17 = vector.shape_cast %16 : vector<4x8xf32> to vector<1x4x8xf32>
    %cst_5 = arith.constant dense<0.000000e+00> : vector<1xf32>
    %18 = vector.multi_reduction <add>, %17, %cst_5 [1, 2] : vector<1x4x8xf32> to vector<1xf32>
    %19 = vector.shape_cast %18 : vector<1xf32> to vector<1x1x1xf32>
    %20 = vector.extract %19[0, 0, 0] : f32 from vector<1x1x1xf32>
    %cst_6 = arith.constant 2.500000e-01 : f32
    %21 = arith.mulf %20, %cst_6 : f32
    %c0_7 = arith.constant 0 : index
    %c0_8 = arith.constant 0 : index
    %22 = vector.load %arg2[%c0_7, %c0_8] : memref<4x1xf32, #tpu.memory_space<vmem>>, vector<4x1xf32>
    %23 = vector.shape_cast %22 : vector<4x1xf32> to vector<1x4x1xf32>
    %cst_9 = arith.constant dense<0.000000e+00> : vector<1xf32>
    %24 = vector.multi_reduction <add>, %23, %cst_9 [1, 2] : vector<1x4x1xf32> to vector<1xf32>
    %25 = vector.shape_cast %24 : vector<1xf32> to vector<1x1x1xf32>
    %26 = vector.extract %25[0, 0, 0] : f32 from vector<1x1x1xf32>
    %cst_10 = arith.constant 2.500000e-01 : f32
    %27 = arith.mulf %26, %cst_10 : f32
    %c0_11 = arith.constant 0 : index
    %c0_12 = arith.constant 0 : index
    %28 = vector.load %arg3[%c0_11, %c0_12] : memref<4x1xf32, #tpu.memory_space<vmem>>, vector<4x1xf32>
    %29 = vector.shape_cast %28 : vector<4x1xf32> to vector<1x4x1xf32>
    %cst_13 = arith.constant dense<0.000000e+00> : vector<1xf32>
    %30 = vector.multi_reduction <add>, %29, %cst_13 [1, 2] : vector<1x4x1xf32> to vector<1xf32>
    %31 = vector.shape_cast %30 : vector<1xf32> to vector<1x1x1xf32>
    %32 = vector.extract %31[0, 0, 0] : f32 from vector<1x1x1xf32>
    %cst_14 = arith.constant 2.500000e-01 : f32
    %33 = arith.mulf %32, %cst_14 : f32
    %c0_15 = arith.constant 0 : index
    %c0_16 = arith.constant 0 : index
    %34 = vector.load %arg5[%c0_15, %c0_16] : memref<4x8xf32, #tpu.memory_space<vmem>>, vector<4x8xf32>
    %35 = vector.shape_cast %34 : vector<4x8xf32> to vector<1x4x8xf32>
    %cst_17 = arith.constant dense<0.000000e+00> : vector<1xf32>
    %36 = vector.multi_reduction <add>, %35, %cst_17 [1, 2] : vector<1x4x8xf32> to vector<1xf32>
    %37 = vector.shape_cast %36 : vector<1xf32> to vector<1x1x1xf32>
    %38 = vector.extract %37[0, 0, 0] : f32 from vector<1x1x1xf32>
    %cst_18 = arith.constant 2.500000e-01 : f32
    %39 = arith.mulf %38, %cst_18 : f32
    %40 = arith.addf %39, %27 : f32
    %41 = arith.addf %40, %33 : f32
    %42 = arith.addf %15, %21 : f32
    %43 = arith.addf %42, %27 : f32
    %44 = arith.addf %43, %33 : f32
    %45 = arith.divf %44, %41 : f32
    %cst_19 = arith.constant 5.000000e-01 : f32
    %46 = arith.subf %45, %cst_19 : f32
    %47 = arith.mulf %46, %46 : f32
    %cst_20 = arith.constant 5.000000e+00 : f32
    %48 = arith.mulf %cst_20, %47 : f32
    %c4_i32_21 = arith.constant 4 : i32
    %49 = arith.minsi %0, %c4_i32_21 : i32
    %50 = arith.sitofp %49 : i32 to f32
    %c0_22 = arith.constant 0 : index
    %c0_23 = arith.constant 0 : index
    %51 = vector.load %arg6[%c0_22, %c0_23] : memref<4x16xf32, #tpu.memory_space<vmem>>, vector<4x16xf32>
    %c0_24 = arith.constant 0 : index
    %c0_25 = arith.constant 0 : index
    %52 = vector.load %arg7[%c0_24, %c0_25] : memref<4x16xf32, #tpu.memory_space<vmem>>, vector<4x16xf32>
    %cst_26 = arith.constant dense<0.000000e+00> : vector<16xf32>
    %53 = vector.multi_reduction <add>, %52, %cst_26 [0] : vector<4x16xf32> to vector<16xf32>
    %54 = vector.shape_cast %53 : vector<16xf32> to vector<1x16xf32>
    %cst_27 = arith.constant 2.500000e-01 : f32
    %55 = vector.broadcast %cst_27 : f32 to vector<1x16xf32>
    %56 = arith.mulf %54, %55 : vector<1x16xf32>
    %57 = tpu.iota {dimensions = array<i32: 0>} : vector<4x1xi32>
    %58 = vector.broadcast %0 : i32 to vector<4x1xi32>
    %59 = arith.cmpi slt, %57, %58 : vector<4x1xi32>
    %cst_28 = arith.constant 0.000000e+00 : f32
    %60 = vector.shape_cast %59 : vector<4x1xi1> to vector<4x1xi1>
    %61 = vector.broadcast %60 : vector<4x1xi1> to vector<4x16xi1>
    %62 = vector.broadcast %cst_28 : f32 to vector<4x16xf32>
    %63 = arith.select %61, %51, %62 : vector<4x16xi1>, vector<4x16xf32>
    %cst_29 = arith.constant dense<0.000000e+00> : vector<16xf32>
    %64 = vector.multi_reduction <add>, %63, %cst_29 [0] : vector<4x16xf32> to vector<16xf32>
    %65 = vector.shape_cast %64 : vector<16xf32> to vector<1x16xf32>
    %66 = vector.broadcast %50 : f32 to vector<1x16xf32>
    %67 = arith.divf %65, %66 : vector<1x16xf32>
    %68 = arith.divf %67, %56 : vector<1x16xf32>
    %cst_30 = arith.constant 0.212132037 : f32
    %69 = vector.broadcast %cst_30 : f32 to vector<1x16xf32>
    %70 = arith.subf %69, %68 : vector<1x16xf32>
    %cst_31 = arith.constant 0.000000e+00 : f32
    %71 = vector.broadcast %cst_31 : f32 to vector<1x16xf32>
    %72 = arith.maximumf %70, %71 : vector<1x16xf32>
    %73 = arith.mulf %72, %72 : vector<1x16xf32>
    %74 = vector.shape_cast %73 : vector<1x16xf32> to vector<1x1x16xf32>
    %cst_32 = arith.constant dense<0.000000e+00> : vector<1xf32>
    %75 = vector.multi_reduction <add>, %74, %cst_32 [1, 2] : vector<1x1x16xf32> to vector<1xf32>
    %76 = vector.shape_cast %75 : vector<1xf32> to vector<1x1x1xf32>
    %77 = vector.extract %76[0, 0, 0] : f32 from vector<1x1x1xf32>
    %cst_33 = arith.constant 1.600000e+01 : f32
    %78 = arith.divf %77, %cst_33 : f32
    %cst_34 = arith.constant 1.000000e+00 : f32
    %79 = vector.broadcast %cst_34 : f32 to vector<1x16xf32>
    %80 = arith.subf %68, %79 : vector<1x16xf32>
    %cst_35 = arith.constant 3.000000e-01 : f32
    %81 = vector.broadcast %cst_35 : f32 to vector<1x16xf32>
    %82 = arith.addf %80, %81 : vector<1x16xf32>
    %cst_36 = arith.constant 0.212132037 : f32
    %83 = vector.broadcast %cst_36 : f32 to vector<1x16xf32>
    %84 = arith.subf %82, %83 : vector<1x16xf32>
    %cst_37 = arith.constant 0.000000e+00 : f32
    %85 = vector.broadcast %cst_37 : f32 to vector<1x16xf32>
    %86 = arith.maximumf %84, %85 : vector<1x16xf32>
    %87 = arith.mulf %86, %86 : vector<1x16xf32>
    %88 = vector.shape_cast %87 : vector<1x16xf32> to vector<1x1x16xf32>
    %cst_38 = arith.constant dense<0.000000e+00> : vector<1xf32>
    %89 = vector.multi_reduction <add>, %88, %cst_38 [1, 2] : vector<1x1x16xf32> to vector<1xf32>
    %90 = vector.shape_cast %89 : vector<1xf32> to vector<1x1x1xf32>
    %91 = vector.extract %90[0, 0, 0] : f32 from vector<1x1x1xf32>
    %cst_39 = arith.constant 1.600000e+01 : f32
    %92 = arith.divf %91, %cst_39 : f32
    %93 = arith.addf %78, %92 : f32
    %cst_40 = arith.constant 1.000000e+00 : f32
    %94 = arith.mulf %cst_40, %93 : f32
    %95 = tpu.iota {dimensions = array<i32: 1>} : vector<1x2xi32>
    %c0_i32 = arith.constant 0 : i32
    %96 = vector.broadcast %c0_i32 : i32 to vector<1x2xi32>
    %97 = arith.cmpi eq, %95, %96 : vector<1x2xi32>
    %98 = vector.broadcast %48 : f32 to vector<1x2xf32>
    %99 = vector.broadcast %94 : f32 to vector<1x2xf32>
    %100 = arith.select %97, %98, %99 : vector<1x2xi1>, vector<1x2xf32>
    %c0_41 = arith.constant 0 : index
    %c0_42 = arith.constant 0 : index
    %101 = vector.load %arg8[%c0_41, %c0_42] : memref<1x2xf32, #tpu.memory_space<vmem>>, vector<1x2xf32>
    tpu.vector_store %arg8[%c0_41, %c0_42], %100 {strides = array<i32>} : memref<1x2xf32, #tpu.memory_space<vmem>>, vector<1x2xf32>,
    return
  }
}

</mosaic_0001>

<bundles_post_ra>
// kernel: loss_forward.1
= control target key start
LH: loop header
LB: loop body
LE: loop exit
PB: predicated region body
PF: predicated region fallthrough
CT: control target
= control target key end

     0   :  { %14 = vsyncpa [#allocation4], 0  ;;  %s328_s30 = smov [#allocation3]   ;;  %s426_s0 = inlined_call_operand.<no memory space> [shape: s32[1], index: 0, kind: input, shape index: {}]   ;;  %s427_s1 = inlined_call_operand.vmem [shape: f32[4,8], index: 1, kind: input, shape index: {}]   ;;  %s428_s2 = inlined_call_operand.vmem [shape: f32[4,1], index: 2, kind: input, shape index: {}]   ;;  %s429_s3 = inlined_call_operand.vmem [shape: f32[4,1], index: 3, kind: input, shape index: {}]   ;;  %s430_s4 = inlined_call_operand.vmem [shape: f32[4,8], index: 4, kind: input, shape index: {}]   ;;  %s431_s5 = inlined_call_operand.vmem [shape: f32[4,8], index: 5, kind: input, shape index: {}]   ;;  %s432_s6 = inlined_call_operand.vmem [shape: f32[4,16], index: 6, kind: input, shape index: {}]   ;;  %s433_s7 = inlined_call_operand.hbm [shape: f32[4,16], index: 7, kind: input, shape index: {}]   ;;  %s434_s8 = inlined_call_operand.vmem [shape: f32[1,2], index: 8, kind: output, shape index: {}]  }
   0x1   :  { %s34_s29 = sshll.u32 %s433_s7, 4  ;;  %s36_s9 = sshll.u32 %s328_s30, 4  ;;  %s35_s29 = int_to_ptr.hbm [resolvable:$true] %s34_s29  ;;  %s37_s9 = int_to_ptr.vmem [resolvable:$true] %s36_s9 }
   0x2   :  { %39 = dma.hbm_to_vmem [thread:$0]  %s35_s29, 64, %s37_s9, [#allocation4]  }
   0x3   :  { %326 = dma.done.wait [#allocation4], 64  }
   0x4   :  { %327 = vsyncadd [#allocation4], 4294967232  ;;  %v49_v0 = vlaneseq  ;;  %p45_p0 = scmp.lt.s32.totalorder %s426_s0, 4  ;;  %v51_v2 = vstv %s426_s0  ;;  %vm97_vm0 = vcmask 3072   ;;  %vm56_vm2 = vcmask 60416  }
   0x5   :  { %vm160_vm3 = vcmask 125952   ;;  %v96_v5 = vld [vmem:[%s428_s2] sm:$0xf]  ;;  %vm211_vm12 = vcmask 122880  }
   0x6   :  { %v50_v1 = vshrl.u32 %v49_v0, 7  ;;  %s438_s0 = smov (!%p45_p0, %s426_s0), 4  ;;  %v48_v6 = vld [vmem:[%s427_s1] sm:$0xf]  ;;  %v98_v8 = vsel %vm97_vm0, %v96_v5, 0.0 }
   0x7   :  { %s47_s15 = scvt.s32.f32 %s438_s0  ;;  %v158_v7 = vld [vmem:[%s432_s6] sm:$0xf]  ;;  %99 = vadd.xlane.f32.xlu1 %v98_v8 }
   0x8   :  { %vm388_vm1 = vcmp.lt.s32.totalorder %v50_v1, %v51_v2  ;;  %v159_v10 = vld [vmem:[#allocation3] sm:$0xf] }
   0x9   :  { %v67_v4 = vstv %s47_s15  ;;  %v55_v9 = vsel %vm388_vm1, %v48_v6, 0.0  ;;  %v169_v11 = vsel %vm388_vm1, %v158_v7, 0.0  ;;  %v161_v13 = vsel %vm160_vm3, %v159_v10, 0.0  ;;  %v121_v15 = vld [vmem:[%s431_s5] sm:$0xf] }
   0xa   :  { %294 = vrcp.f32 %v67_v4  ;;  %v57_v12 = vsel %vm56_vm2, %v55_v9, 0.0  ;;  %v170_v14 = vsel %vm160_vm3, %v169_v11, 0.0  ;;  %v162_v16 = vrot.slane %v161_v13, 4  ;;  %v109_v18 = vld [vmem:[%s429_s3] sm:$0xf] }
   0xb   :  { %58 = vadd.xlane.f32.xlu0 %v57_v12  ;;  %v122_v17 = vsel %vm56_vm2, %v121_v15, 0.0  ;;  %v171_v20 = vrot.slane %v170_v14, 4  ;;  %v84_v21 = vld [vmem:[%s430_s4] sm:$0xf]  ;;  %v110_v24 = vsel %vm97_vm0, %v109_v18, 0.0  ;;  %vm73_vm4 = vweird.f32 %v67_v4 }
   0xc   :  { %123 = vadd.xlane.f32.xlu2 %v122_v17  ;;  %v163_v19 = vadd.f32 %v162_v16, %v161_v13  ;;  %v85_v25 = vsel %vm56_vm2, %v84_v21, 0.0  ;;  %v79_v36 = vand.u32 2147483648, %v67_v4  ;;  %v77_v38 = vand.u32 2147483647, %v67_v4 }
   0xd   :  { %v172_v28 = vadd.f32 %v171_v20, %v170_v14  ;;  %vm262_vm3 = vcmask 8192  }
   0xe   :  { %v164_v23 = vrot.slane %v163_v19, 2  ;;  %v80_v41 = vor.u32 1.1754944e-38, %v79_v36  ;;  %vm78_vm7 = vcmp.eq.f32.partialorder %v77_v38, 8.507059e+37  ;;  %v329_v38 = vmov 16.0  }
   0xf   :  { %111 = vadd.xlane.f32.xlu1 %v110_v24  ;;  %v173_v32 = vrot.slane %v172_v28, 2 }
  0x10   :  { %v295_v22 = vpop.eup %294  ;;  %v165_v27 = vadd.f32 %v164_v23, %v163_v19 }
  0x11   :  { %v69_v26 = vmul.f32 %v295_v22, %v67_v4  ;;  %v174_v35 = vadd.f32 %v173_v32, %v172_v28  ;;  %vm74_vm5 = vweird.f32 %v295_v22 }
  0x12   :  { %v166_v29 = vrot.slane %v165_v27, 1  ;;  %vm75_vm6 = vmor %vm73_vm4, %vm74_vm5 }
  0x13   :  { %86 = vadd.xlane.f32.xlu0 %v85_v25  ;;  %v70_v30 = vsub.f32 1.0, %v69_v26  ;;  %v175_v39 = vrot.slane %v174_v35, 1 }
  0x14   :  { %v167_v31 = vadd.f32 %v166_v29, %v165_v27 }
  0x15   :  { %v71_v34 = vmul.f32 %v295_v22, %v70_v30  ;;  %v176_v44 = vadd.f32 %v175_v39, %v174_v35 }
  0x16   :  { %v168_v33 = vmul.f32 0.25, %v167_v31 }
  0x17   :  { %v72_v37 = vadd.f32 %v295_v22, %v71_v34 }
  0x18   :  { %296 = vrcp.f32 %v168_v33  ;;  %v204_v45 = vand.u32 2147483648, %v168_v33  ;;  %vm198_vm8 = vweird.f32 %v168_v33  ;;  %v202_v47 = vand.u32 2147483647, %v168_v33 }
  0x19   :  { %v76_v42 = vsel %vm75_vm6, %v295_v22, %v72_v37  ;;  %298 = vrcp.f32 %v329_v38 }
  0x1a   :  { %v81_v48 = vsel %vm78_vm7, %v80_v41, %v76_v42  ;;  %v205_v50 = vor.u32 1.1754944e-38, %v204_v45  ;;  %vm203_vm11 = vcmp.eq.f32.partialorder %v202_v47, 8.507059e+37 }
  0x1b   :  { %v192_v51 = vmul.f32 %v176_v44, %v81_v48 }
  0x1e   :  { %v297_v40 = vpop.eup %296 }
  0x1f   :  { %v194_v43 = vmul.f32 %v297_v40, %v168_v33  ;;  %vm199_vm9 = vweird.f32 %v297_v40  ;;  %v299_v42 = vpop.eup %298 }
  0x20   :  { %vm200_vm10 = vmor %vm198_vm8, %vm199_vm9  ;;  %vm227_vm15 = vweird.f32 %v299_v42 }
  0x21   :  { %v195_v46 = vsub.f32 1.0, %v194_v43 }
  0x23   :  { %v196_v49 = vmul.f32 %v297_v40, %v195_v46  ;;  %v223_v46 = vmul.f32 16.0, %v299_v42 }
  0x25   :  { %v197_v52 = vadd.f32 %v297_v40, %v196_v49  ;;  %v224_v49 = vsub.f32 1.0, %v223_v46 }
  0x27   :  { %v201_v53 = vsel %vm200_vm10, %v297_v40, %v197_v52 }
  0x28   :  { %v206_v54 = vsel %vm203_vm11, %v205_v50, %v201_v53 }
  0x29   :  { %v207_v55 = vmul.f32 %v206_v54, %v192_v51  ;;  %v225_v54 = vmul.f32 %v299_v42, %v224_v49 }
  0x2b   :  { %v208_v56 = vsub.f32 0.21213204, %v207_v55  ;;  %v270_v57 = vadd.f32 -1.0, %v207_v55 }
  0x2d   :  { %v209_v58 = vmax.f32 %v208_v56, 0.0  ;;  %v232_v59 = vadd.f32 0.3, %v270_v57 }
  0x2f   :  { %v210_v60 = vmul.f32 %v209_v58, %v209_v58  ;;  %v271_v61 = vadd.f32 -0.21213204, %v232_v59 }
  0x31   :  { %v212_v62 = vsel %vm211_vm12, %v210_v60, 0.0  ;;  %v234_v63 = vmax.f32 %v271_v61, 0.0  ;;  %v226_v61 = vadd.f32 %v299_v42, %v225_v54 }
  0x32   :  { %213 = vadd.xlane.f32.xlu2 %v212_v62 }
  0x33   :  { %v235_v1 = vmul.f32 %v234_v63, %v234_v63 }
  0x35   :  { %v236_v2 = vsel %vm211_vm12, %v235_v1, 0.0 }
  0x36   :  { %237 = vadd.xlane.f32.xlu0 %v236_v2 }
  0x7a   :  { %v100_v3 = vpop.xlane.xlu1 %99 }
  0x7b   :  { %v101_v4 = vrot.slane %v100_v3, 4 }
  0x7d   :  { %v102_v10 = vadd.f32 %v101_v4, %v100_v3 }
  0x7e   :  { %v59_v5 = vpop.xlane.xlu0 %58 }
  0x7f   :  { %v60_v6 = vrot.slane %v59_v5, 4  ;;  %v124_v7 = vpop.xlane.xlu2 %123  ;;  %v103_v15 = vrot.slane %v102_v10, 2 }
  0x80   :  { %v125_v8 = vrot.slane %v124_v7, 4 }
  0x81   :  { %v61_v9 = vadd.f32 %v60_v6, %v59_v5  ;;  %v104_v25 = vadd.f32 %v103_v15, %v102_v10  ;;  %v228_v5 = vsel %vm227_vm15, %v299_v42, %v226_v61 }
  0x82   :  { %v126_v12 = vadd.f32 %v125_v8, %v124_v7  ;;  %v112_v13 = vpop.xlane.xlu1 %111  ;;  %v257_v7 = vand.u32 127, %v49_v0 }
  0x83   :  { %v62_v11 = vrot.slane %v61_v9, 2  ;;  %v113_v16 = vrot.slane %v112_v13, 4  ;;  %v105_v30 = vrot.slane %v104_v25, 1 }
  0x84   :  { %v127_v20 = vrot.slane %v126_v12, 2  ;;  %vm258_vm2 = vcmp.eq.s32.totalorder %v257_v7, 0 }
  0x85   :  { %v63_v14 = vadd.f32 %v62_v11, %v61_v9  ;;  %v114_v21 = vadd.f32 %v113_v16, %v112_v13  ;;  %v106_v36 = vadd.f32 %v105_v30, %v104_v25 }
  0x86   :  { %v87_v17 = vpop.xlane.xlu0 %86  ;;  %v128_v28 = vadd.f32 %v127_v20, %v126_v12 }
  0x87   :  { %v88_v18 = vrot.slane %v87_v17, 4  ;;  %v64_v19 = vrot.slane %v63_v14, 1  ;;  %v115_v24 = vrot.slane %v114_v21, 2 }
  0x88   :  { %v129_v33 = vrot.slane %v128_v28, 1 }
  0x89   :  { %v89_v22 = vadd.f32 %v88_v18, %v87_v17  ;;  %v65_v23 = vadd.f32 %v64_v19, %v63_v14  ;;  %v116_v27 = vadd.f32 %v115_v24, %v114_v21 }
  0x8a   :  { %v130_v37 = vadd.f32 %v129_v33, %v128_v28 }
  0x8b   :  { %v90_v26 = vrot.slane %v89_v22, 2  ;;  %272 = vpush %v65_v23  ;;  %v117_v31 = vrot.slane %v116_v27, 1 }
  0x8c   :  { %274 = vpush %v81_v48 }
  0x8d   :  { %v91_v29 = vadd.f32 %v90_v26, %v89_v22  ;;  %v118_v35 = vadd.f32 %v117_v31, %v116_v27 }
  0x8f   :  { %v92_v32 = vrot.slane %v91_v29, 1 }
  0x91   :  { %v93_v34 = vadd.f32 %v92_v32, %v91_v29 }
  0x93   :  { %276 = vpush %v93_v34 }
  0x94   :  { %278 = vpush %v106_v36 }
  0x95   :  { %280 = vpush %v118_v35 }
  0x96   :  { %282 = vpush %v130_v37 }
  0xa5   :  { %v214_v39 = vpop.xlane.xlu2 %213 }
  0xa6   :  { %v215_v41 = vrot.slane %v214_v39, 4 }
  0xa8   :  { %v216_v45 = vadd.f32 %v215_v41, %v214_v39 }
  0xa9   :  { %v238_v40 = vpop.xlane.xlu0 %237 }
  0xaa   :  { %v239_v43 = vrot.slane %v238_v40, 4  ;;  %v217_v48 = vrot.slane %v216_v45, 2 }
  0xac   :  { %v240_v47 = vadd.f32 %v239_v43, %v238_v40  ;;  %v218_v53 = vadd.f32 %v217_v48, %v216_v45 }
  0xae   :  { %v241_v51 = vrot.slane %v240_v47, 2  ;;  %v219_v60 = vrot.slane %v218_v53, 1 }
  0xb0   :  { %v242_v56 = vadd.f32 %v241_v51, %v240_v47  ;;  %v220_v4 = vadd.f32 %v219_v60, %v218_v53 }
  0xb2   :  { %v243_v1 = vrot.slane %v242_v56, 1 }
  0xb4   :  { %v244_v6 = vadd.f32 %v243_v1, %v242_v56 }
  0xbc   :  { %s273_s3 = spop %272 }
  0xbd   :  { %s275_s4 = spop %274 }
  0xbe   :  { %s83_s5 = smul.f32 %s275_s4, %s273_s3 }
  0xc4   :  { %s277_s24 = spop %276 }
  0xc5   :  { %s95_s25 = smul.f32 0.25, %s277_s24  ;;  %s279_s26 = spop %278 }
  0xc6   :  { %s281_s27 = spop %280  ;;  %s108_s29 = smul.f32 0.25, %s279_s26 }
  0xc7   :  { %s135_s28 = sadd.f32 %s95_s25, %s83_s5  ;;  %s283_s30 = spop %282 }
  0xc8   :  { %s132_s10 = smul.f32 0.25, %s283_s30 }
  0xc9   :  { %s136_s9 = sadd.f32 %s135_s28, %s108_s29  ;;  %s120_s11 = smul.f32 0.25, %s281_s27 }
  0xca   :  { %s133_s12 = sadd.f32 %s132_s10, %s108_s29 }
  0xcb   :  { %s419_s13 = sadd.f32 %s136_s9, %s120_s11 }
  0xcc   :  { %s134_s14 = sadd.f32 %s133_s12, %s120_s11 }
  0xce   :  { %v138_v44 = vstv %s134_s14 }
  0xcf   :  { %300 = vrcp.f32 %v138_v44  ;;  %v150_v57 = vand.u32 2147483648, %v138_v44  ;;  %v148_v59 = vand.u32 2147483647, %v138_v44  ;;  %vm144_vm14 = vweird.f32 %v138_v44 }
  0xd1   :  { %v151_v63 = vor.u32 1.1754944e-38, %v150_v57  ;;  %vm149_vm1 = vcmp.eq.f32.partialorder %v148_v59, 8.507059e+37 }
  0xd5   :  { %v301_v50 = vpop.eup %300 }
  0xd6   :  { %v140_v52 = vmul.f32 %v301_v50, %v138_v44  ;;  %vm145_vm13 = vweird.f32 %v301_v50 }
  0xd7   :  { %vm146_vm0 = vmor %vm144_vm14, %vm145_vm13 }
  0xd8   :  { %v141_v55 = vsub.f32 1.0, %v140_v52 }
  0xda   :  { %v142_v58 = vmul.f32 %v301_v50, %v141_v55 }
  0xdc   :  { %v143_v62 = vadd.f32 %v301_v50, %v142_v58 }
  0xde   :  { %v147_v2 = vsel %vm146_vm0, %v301_v50, %v143_v62 }
  0xdf   :  { %v152_v3 = vsel %vm149_vm1, %v151_v63, %v147_v2 }
  0xe0   :  { %284 = vpush %v152_v3 }
  0xe1   :  { %286 = vpush %v220_v4 }
  0xe2   :  { %288 = vpush %v228_v5 }
  0xe3   :  { %290 = vpush %v244_v6 }
 0x111   :  { %s285_s7 = spop %284 }
 0x112   :  { %s154_s15 = smul.f32 %s285_s7, %s419_s13  ;;  %s287_s16 = spop %286 }
 0x113   :  { %s289_s17 = spop %288 }
 0x114   :  { %s269_s18 = sadd.f32 -0.5, %s154_s15  ;;  %s230_s19 = smul.f32 %s289_s17, %s287_s16 }
 0x115   :  { %s291_s20 = spop %290 }
 0x116   :  { %s156_s21 = smul.f32 %s269_s18, %s269_s18 }
 0x117   :  { %s254_s0 = smul.f32 %s291_s20, %s289_s17 }
 0x118   :  { %s157_s1 = smul.f32 5.0, %s156_s21 }
 0x119   :  { %s255_s2 = sadd.f32 %s254_s0, %s230_s19 }
 0x11a   :  { %v259_v8 = vstv %s157_s1 }
 0x11b   :  { %v260_v9 = vstv %s255_s2 }
 0x11c   :  { %v261_v10 = vsel %vm258_vm2, %v259_v8, %v260_v9 }
 0x11d   :  { %263 = vst.msk [vmem:[%s434_s8] sm:$0x1] %vm262_vm3, %v261_v10 }
 0x11e   :  { %268 = vsyncpa [#allocation4], 1 }

</bundles_post_ra>
